<compile_context>
chip_gen: v6e
topology: v6e:2x2x1
jax: 0.10.0
libtpu: 0.0.40
codegen_flags: <defaults>
</compile_context>

<pallas_src>
import functools

import jax
import jax.numpy as jnp
from jax.experimental import pallas as pl
from jax.experimental.pallas import tpu as pltpu


def _query_vmem_limit():
    """Generation-aware scoped-VMEM budget (~3/4 of physical, capped at 96 MiB)."""
    try:
        cap = int(getattr(pltpu.get_tpu_info(), "vmem_capacity_bytes",
                          128 * 1024 * 1024))
    except Exception:
        cap = 64 * 1024 * 1024          # conservative (v7x physical)
    return int(min(96 * 1024 * 1024, max(32 * 1024 * 1024, cap * 3 // 4)))


_VMEM_LIMIT = _query_vmem_limit()
_WEIGHT_RESIDENT_BYTES = min(16 * 1024 * 1024, _VMEM_LIMIT // 4)


def _pick_tile(dim, cap, align):
    """Largest `align`-multiple <= cap that divides `dim`; full dim if dim <= cap or no such
    divisor exists (a full-dim block is always a legal BlockSpec)."""
    if dim <= cap:
        return dim
    t = (cap // align) * align
    while t >= align:
        if dim % t == 0:
            return t
        t -= align
    return dim


# ----------------------- fused linear (+bias / +add / +ReLU / +LayerNorm) -----------------------

def _fused_linear_kernel(*refs, k_streamed, has_bias, has_add, has_ln, act):
    if k_streamed:
        in_refs, o_ref, acc_ref = refs[:-2], refs[-2], refs[-1]
    else:
        in_refs, o_ref, acc_ref = refs[:-1], refs[-1], None

    it = iter(in_refs)
    x_ref = next(it)
    w_ref = next(it)
    b_ref = next(it) if has_bias else None
    add_ref = next(it) if has_add else None
    g_ref = next(it) if has_ln else None
    beta_ref = next(it) if has_ln else None

    def epilogue(y):                       # y is f32 (tm, N)
        if has_bias:
            y = y + b_ref[...]
        if has_add:
            y = y + add_ref[...].astype(jnp.float32)
        if act == "relu":
            y = jnp.maximum(y, 0.0)
        if has_ln:
            mean = jnp.mean(y, axis=-1, keepdims=True)
            var = jnp.mean((y - mean) ** 2, axis=-1, keepdims=True)
            y = (y - mean) * jax.lax.rsqrt(var + 1e-5) * g_ref[...] + beta_ref[...]
        o_ref[...] = y.astype(o_ref.dtype)

    if k_streamed:
        @pl.when(pl.program_id(1) == 0)
        def _():
            acc_ref[...] = jnp.zeros(acc_ref.shape, jnp.float32)

        acc_ref[...] += jnp.dot(x_ref[...], w_ref[...],
                                preferred_element_type=jnp.float32)

        @pl.when(pl.program_id(1) == pl.num_programs(1) - 1)
        def _():
            epilogue(acc_ref[...])
    else:
        epilogue(jnp.dot(x_ref[...], w_ref[...],
                         preferred_element_type=jnp.float32))


def fused_linear(x, w, b=None, *, add=None, ln=None, act="none", out_dtype=None):
    """y = [LayerNorm]( [relu]( x @ w + b + add ) ).  x:(M,K), w:(K,N) bf16, add:(M,N)."""
    M, K = x.shape
    N = w.shape[1]
    out_dtype = out_dtype or x.dtype
    x = x.astype(jnp.bfloat16)
    w = w.astype(jnp.bfloat16)

    # Row-budget-aware M tile (bf16 packs 16 sublanes per vreg -> align 16).
    row_bytes = 4 * (K + 3 * N) + 32
    tm_cap = max(16, min(512, (_VMEM_LIMIT // 3) // max(row_bytes, 1)))
    tm_cap = max(16, (tm_cap // 16) * 16)
    tm = _pick_tile(M, tm_cap, 16)

    weight_resident = (2 * K * N) <= _WEIGHT_RESIDENT_BYTES

    if weight_resident:
        grid = (M // tm,)
        x_spec = pl.BlockSpec((tm, K), lambda i: (i, 0))
        w_spec = pl.BlockSpec((K, N), lambda i: (0, 0))
        vec_spec = pl.BlockSpec((1, N), lambda i: (0, 0))
        add_spec = pl.BlockSpec((tm, N), lambda i: (i, 0))
        out_spec = pl.BlockSpec((tm, N), lambda i: (i, 0))
        scratch = []
        dims = ("parallel",)
    else:
        tk = _pick_tile(K, 1024, 128)
        grid = (M // tm, K // tk)
        x_spec = pl.BlockSpec((tm, tk), lambda i, k: (i, k))
        w_spec = pl.BlockSpec((tk, N), lambda i, k: (k, 0))
        vec_spec = pl.BlockSpec((1, N), lambda i, k: (0, 0))
        add_spec = pl.BlockSpec((tm, N), lambda i, k: (i, 0))
        out_spec = pl.BlockSpec((tm, N), lambda i, k: (i, 0))
        scratch = [pltpu.VMEM((tm, N), jnp.float32)]
        dims = ("parallel", "arbitrary")

    in_specs = [x_spec, w_spec]
    args = [x, w]
    if b is not None:
        in_specs.append(vec_spec)
        args.append(b.reshape(1, N).astype(jnp.float32))
    if add is not None:
        in_specs.append(add_spec)
        args.append(add)
    if ln is not None:
        g, beta = ln
        in_specs += [vec_spec, vec_spec]
        args += [g.reshape(1, N).astype(jnp.float32),
                 beta.reshape(1, N).astype(jnp.float32)]

    kern = functools.partial(
        _fused_linear_kernel,
        k_streamed=not weight_resident,
        has_bias=b is not None,
        has_add=add is not None,
        has_ln=ln is not None,
        act=act)

    return pl.pallas_call(
        kern,
        out_shape=jax.ShapeDtypeStruct((M, N), out_dtype),
        grid=grid,
        in_specs=in_specs,
        out_specs=out_spec,
        scratch_shapes=scratch,
        compiler_params=pltpu.CompilerParams(
            dimension_semantics=dims, vmem_limit_bytes=_VMEM_LIMIT),
    )(*args)


# ------------------------------ flash-style multi-head attention ------------------------------

def _flash_mha_kernel(q_ref, k_ref, v_ref, o_ref, m_sc, l_sc, acc_sc, *, scale):
    kv = pl.program_id(3)

    @pl.when(kv == 0)
    def _():
        m_sc[...] = jnp.full(m_sc.shape, -jnp.inf, jnp.float32)
        l_sc[...] = jnp.zeros(l_sc.shape, jnp.float32)
        acc_sc[...] = jnp.zeros(acc_sc.shape, jnp.float32)

    q = q_ref[0, 0]                    # (tq, hd)
    k = k_ref[0, 0]                    # (tkv, hd)
    v = v_ref[0, 0]                    # (tkv, hd)

    s = jax.lax.dot_general(q, k, (((1,), (1,)), ((), ())),
                            preferred_element_type=jnp.float32) * scale   # (tq, tkv)

    m_prev = m_sc[...]
    m_new = jnp.maximum(m_prev, jnp.max(s, axis=-1, keepdims=True))
    alpha = jnp.exp(m_prev - m_new)
    p = jnp.exp(s - m_new)
    l_sc[...] = alpha * l_sc[...] + jnp.sum(p, axis=-1, keepdims=True)
    acc_sc[...] = alpha * acc_sc[...] + jnp.dot(p.astype(v.dtype), v,
                                                preferred_element_type=jnp.float32)
    m_sc[...] = m_new

    @pl.when(kv == pl.num_programs(3) - 1)
    def _():
        # exact normalization (no approx reciprocal) to track the PyTorch reference
        o_ref[0, 0] = (acc_sc[...] / l_sc[...]).astype(o_ref.dtype)


def flash_mha(q, k, v):
    """q/k/v: (B, num_heads, S, head_dim) -> (B, num_heads, S, head_dim) softmax(qk^T/sqrt(d))v."""
    B, NH, S, HD = q.shape
    scale = 1.0 / float(HD) ** 0.5
    tq = _pick_tile(S, 512, 16)
    tkv = _pick_tile(S, 512, 16)
    grid = (B, NH, S // tq, S // tkv)
    return pl.pallas_call(
        functools.partial(_flash_mha_kernel, scale=scale),
        out_shape=jax.ShapeDtypeStruct((B, NH, S, HD), q.dtype),
        grid=grid,
        in_specs=[
            pl.BlockSpec((1, 1, tq, HD), lambda b, h, qi, ki: (b, h, qi, 0)),
            pl.BlockSpec((1, 1, tkv, HD), lambda b, h, qi, ki: (b, h, ki, 0)),
            pl.BlockSpec((1, 1, tkv, HD), lambda b, h, qi, ki: (b, h, ki, 0)),
        ],
        out_specs=pl.BlockSpec((1, 1, tq, HD), lambda b, h, qi, ki: (b, h, qi, 0)),
        scratch_shapes=[pltpu.VMEM((tq, 1), jnp.float32),
                        pltpu.VMEM((tq, 1), jnp.float32),
                        pltpu.VMEM((tq, HD), jnp.float32)],
        compiler_params=pltpu.CompilerParams(
            dimension_semantics=("parallel", "parallel", "parallel", "arbitrary"),
            vmem_limit_bytes=_VMEM_LIMIT),
    )(q, k, v)


# ----------------------------------------- model glue -----------------------------------------

def make_positional_encoding(d_model, max_len=1000):
    pos = jnp.arange(max_len, dtype=jnp.float32)[:, None]
    div = jnp.exp(jnp.arange(0, d_model, 2, dtype=jnp.float32)
                  * (-jnp.log(10000.0) / d_model))
    pe = jnp.zeros((max_len, d_model), dtype=jnp.float32)
    pe = pe.at[:, 0::2].set(jnp.sin(pos * div))
    pe = pe.at[:, 1::2].set(jnp.cos(pos * div))
    return pe  # (max_len, d_model)


def init_params(key, input_size, output_size, num_layers, hidden_size):
    def nrm(k, shape, scale=0.05, dtype=jnp.bfloat16):
        return (scale * jax.random.normal(k, shape, dtype=jnp.float32)).astype(dtype)

    keys = jax.random.split(key, 4 + num_layers)
    params = {
        # weights bf16 (MXU-native); biases / LN params / PE stay f32
        "emb_w": nrm(keys[0], (input_size, hidden_size)),
        "emb_b": nrm(keys[1], (hidden_size,), dtype=jnp.float32),
        "dec_w": nrm(keys[2], (hidden_size, output_size)),
        "dec_b": nrm(keys[3], (output_size,), dtype=jnp.float32),
        "pe": make_positional_encoding(hidden_size),
        "layers": [],
    }
    for li in range(num_layers):
        lk = jax.random.split(keys[4 + li], 8)
        params["layers"].append({
            # attention projections stored (in, out); column order [q | k | v], heads contiguous
            "in_proj_w": nrm(lk[0], (hidden_size, 3 * hidden_size)),
            "in_proj_b": nrm(lk[1], (3 * hidden_size,), dtype=jnp.float32),
            "out_proj_w": nrm(lk[2], (hidden_size, hidden_size)),
            "out_proj_b": nrm(lk[3], (hidden_size,), dtype=jnp.float32),
            # feed-forward (dim_feedforward == hidden_size in the reference constructor)
            "ff_w1": nrm(lk[4], (hidden_size, hidden_size)),
            "ff_b1": nrm(lk[5], (hidden_size,), dtype=jnp.float32),
            "ff_w2": nrm(lk[6], (hidden_size, hidden_size)),
            "ff_b2": nrm(lk[7], (hidden_size,), dtype=jnp.float32),
            "ln1_g": jnp.ones((hidden_size,), jnp.float32),
            "ln1_b": jnp.zeros((hidden_size,), jnp.float32),
            "ln2_g": jnp.ones((hidden_size,), jnp.float32),
            "ln2_b": jnp.zeros((hidden_size,), jnp.float32),
        })
    return params


@functools.partial(jax.jit, static_argnames=("num_heads",))
def transformer_forward(src, params, num_heads):
    # src: (S, B, input_size), seq-first like PyTorch; convert once to a flat (B*S, ·) slab.
    S, B, In = src.shape
    H = params["emb_w"].shape[1]
    hd = H // num_heads

    x = src.transpose(1, 0, 2).reshape(B * S, In).astype(jnp.bfloat16)

    # Embedding Linear fused with PE add: fold emb_b into the PE table, tile over batch.
    pe_b = (params["pe"][:S] + params["emb_b"][None, :]).astype(jnp.float32)       # (S, H)
    pe_b = jnp.broadcast_to(pe_b[None], (B, S, H)).reshape(B * S, H)               # (B*S, H)
    x = fused_linear(x, params["emb_w"], None, add=pe_b)                           # (B*S, H) bf16

    for lp in params["layers"]:
        # --- multi-head self-attention ---
        qkv = fused_linear(x, lp["in_proj_w"], lp["in_proj_b"])                    # (B*S, 3H)
        qkv = qkv.reshape(B, S, 3, num_heads, hd).transpose(2, 0, 3, 1, 4)         # (3,B,nh,S,hd)
        attn = flash_mha(qkv[0], qkv[1], qkv[2])                                   # (B,nh,S,hd)
        attn = attn.transpose(0, 2, 1, 3).reshape(B * S, H)

        # fused out_proj + residual + LayerNorm1 (post-norm)
        x = fused_linear(attn, lp["out_proj_w"], lp["out_proj_b"],
                         add=x, ln=(lp["ln1_g"], lp["ln1_b"]))

        # feed-forward: ff1+ReLU fused; ff2 + residual + LayerNorm2 fused
        ff = fused_linear(x, lp["ff_w1"], lp["ff_b1"], act="relu")
        x = fused_linear(ff, lp["ff_w2"], lp["ff_b2"],
                         add=x, ln=(lp["ln2_g"], lp["ln2_b"]))

    # Decoder Linear: pad N up to a lane-dense multiple of 128 (unmasked vst), slice after.
    dec_w, dec_b = params["dec_w"], params["dec_b"]
    n_out = dec_w.shape[1]
    n_pad = max(128, ((n_out + 127) // 128) * 128)
    if n_pad != n_out:
        dec_w = jnp.pad(dec_w, ((0, 0), (0, n_pad - n_out)))
        dec_b = jnp.pad(dec_b, (0, n_pad - n_out))
    out = fused_linear(x, dec_w, dec_b, out_dtype=jnp.float32)[:, :n_out]          # (B*S, Out)
    return out.reshape(B, S, n_out).transpose(1, 0, 2)                             # (S, B, Out)


# ----------------------------------------- demo -----------------------------------------

if __name__ == "__main__":
    INPUT_SIZE = 16
    OUTPUT_SIZE = 8
    HIDDEN = 32
    NUM_HEADS = 4
    NUM_LAYERS = 2
    SEQ = 8
    BATCH = 2

    root = jax.random.PRNGKey(0)
    k_param, k_data = jax.random.split(root)
    params = init_params(k_param, INPUT_SIZE, OUTPUT_SIZE, NUM_LAYERS, HIDDEN)
    src = jax.random.normal(k_data, (SEQ, BATCH, INPUT_SIZE), dtype=jnp.float32)

    out = transformer_forward(src, params, num_heads=NUM_HEADS)
    out = jax.block_until_ready(out)
    assert out.shape == (SEQ, BATCH, OUTPUT_SIZE)
    assert bool(jnp.all(jnp.isfinite(out)))
    print("KERNEL_OK")
</pallas_src>

<mosaic_0001>
module attributes {stable_mosaic.version = 11 : i64} {
  func.func @_fused_linear_kernel(%arg0: i32, %arg1: memref<16x32xbf16, #tpu.memory_space<vmem>>, %arg2: memref<32x96xbf16, #tpu.memory_space<vmem>>, %arg3: memref<1x96xf32, #tpu.memory_space<vmem>>, %arg4: memref<16x96xbf16, #tpu.memory_space<vmem>>) attributes {dimension_semantics = [#tpu.dimension_semantics<parallel>], iteration_bounds = array<i64: 1>, scalar_prefetch = 0 : i64, scratch_operands = 0 : i64, tpu.core_type = #tpu.core_type<tc>, window_params = [{transform_indices = @transform_0, window_bounds = array<i64: 16, 32>}, {pipeline_mode = #tpu.pipeline_mode<synchronous>, transform_indices = @transform_1, window_bounds = array<i64: 32, 96>}, {pipeline_mode = #tpu.pipeline_mode<synchronous>, transform_indices = @transform_2, window_bounds = array<i64: 1, 96>}, {transform_indices = @transform_3, window_bounds = array<i64: 16, 96>}]} {
    %c0 = arith.constant 0 : index
    %c0_0 = arith.constant 0 : index
    %0 = vector.load %arg1[%c0, %c0_0] : memref<16x32xbf16, #tpu.memory_space<vmem>>, vector<16x32xbf16>
    %c0_1 = arith.constant 0 : index
    %c0_2 = arith.constant 0 : index
    %1 = vector.load %arg2[%c0_1, %c0_2] : memref<32x96xbf16, #tpu.memory_space<vmem>>, vector<32x96xbf16>
    %cst = arith.constant dense<0.000000e+00> : vector<16x96xf32>
    %2 = tpu.matmul %0, %1, %cst {dimension_numbers = #tpu.dot_dimension_numbers<[1], [0], [0], [1], [0, 0, 1, 1], [], []>} : vector<16x32xbf16>, vector<32x96xbf16>, vector<16x96xf32> -> vector<16x96xf32>
    %c0_3 = arith.constant 0 : index
    %c0_4 = arith.constant 0 : index
    %3 = vector.load %arg3[%c0_3, %c0_4] : memref<1x96xf32, #tpu.memory_space<vmem>>, vector<1x96xf32>
    %4 = vector.broadcast %3 : vector<1x96xf32> to vector<16x96xf32>
    %5 = arith.addf %2, %4 : vector<16x96xf32>
    %6 = arith.truncf %5 : vector<16x96xf32> to vector<16x96xbf16>
    %c0_5 = arith.constant 0 : index
    %c0_6 = arith.constant 0 : index
    %7 = vector.load %arg4[%c0_5, %c0_6] : memref<16x96xbf16, #tpu.memory_space<vmem>>, vector<16x96xbf16>
    tpu.vector_store %arg4[%c0_5, %c0_6], %6 {strides = array<i32>} : memref<16x96xbf16, #tpu.memory_space<vmem>>, vector<16x96xbf16>,
    return
  }
  func.func @transform_0(%arg0: i32) -> (i32, i32) {
    %c0_i32 = arith.constant 0 : i32
    %c0_i32_0 = arith.constant 0 : i32
    return %arg0, %c0_i32 : i32, i32
  }
  func.func @transform_1(%arg0: i32) -> (i32, i32) {
    %c0_i32 = arith.constant 0 : i32
    %c0_i32_0 = arith.constant 0 : i32
    %c0_i32_1 = arith.constant 0 : i32
    return %c0_i32, %c0_i32_0 : i32, i32
  }
  func.func @transform_2(%arg0: i32) -> (i32, i32) {
    %c0_i32 = arith.constant 0 : i32
    %c0_i32_0 = arith.constant 0 : i32
    %c0_i32_1 = arith.constant 0 : i32
    return %c0_i32, %c0_i32_0 : i32, i32
  }
  func.func @transform_3(%arg0: i32) -> (i32, i32) {
    %c0_i32 = arith.constant 0 : i32
    %c0_i32_0 = arith.constant 0 : i32
    return %arg0, %c0_i32 : i32, i32
  }
}

module attributes {stable_mosaic.version = 11 : i64} {
  func.func @_fused_linear_kernel(%arg0: i32, %arg1: memref<16x16xbf16, #tpu.memory_space<vmem>>, %arg2: memref<16x32xbf16, #tpu.memory_space<vmem>>, %arg3: memref<16x32xf32, #tpu.memory_space<vmem>>, %arg4: memref<16x32xbf16, #tpu.memory_space<vmem>>) attributes {dimension_semantics = [#tpu.dimension_semantics<parallel>], iteration_bounds = array<i64: 1>, scalar_prefetch = 0 : i64, scratch_operands = 0 : i64, tpu.core_type = #tpu.core_type<tc>, window_params = [{transform_indices = @transform_0, window_bounds = array<i64: 16, 16>}, {pipeline_mode = #tpu.pipeline_mode<synchronous>, transform_indices = @transform_1, window_bounds = array<i64: 16, 32>}, {transform_indices = @transform_2, window_bounds = array<i64: 16, 32>}, {transform_indices = @transform_3, window_bounds = array<i64: 16, 32>}]} {
    %c0 = arith.constant 0 : index
    %c0_0 = arith.constant 0 : index
    %0 = vector.load %arg1[%c0, %c0_0] : memref<16x16xbf16, #tpu.memory_space<vmem>>, vector<16x16xbf16>
    %c0_1 = arith.constant 0 : index
    %c0_2 = arith.constant 0 : index
    %1 = vector.load %arg2[%c0_1, %c0_2] : memref<16x32xbf16, #tpu.memory_space<vmem>>, vector<16x32xbf16>
    %cst = arith.constant dense<0.000000e+00> : vector<16x32xf32>
    %2 = tpu.matmul %0, %1, %cst {dimension_numbers = #tpu.dot_dimension_numbers<[1], [0], [0], [1], [0, 0, 1, 1], [], []>} : vector<16x16xbf16>, vector<16x32xbf16>, vector<16x32xf32> -> vector<16x32xf32>
    %c0_3 = arith.constant 0 : index
    %c0_4 = arith.constant 0 : index
    %3 = vector.load %arg3[%c0_3, %c0_4] : memref<16x32xf32, #tpu.memory_space<vmem>>, vector<16x32xf32>
    %4 = arith.addf %2, %3 : vector<16x32xf32>
    %5 = arith.truncf %4 : vector<16x32xf32> to vector<16x32xbf16>
    %c0_5 = arith.constant 0 : index
    %c0_6 = arith.constant 0 : index
    %6 = vector.load %arg4[%c0_5, %c0_6] : memref<16x32xbf16, #tpu.memory_space<vmem>>, vector<16x32xbf16>
    tpu.vector_store %arg4[%c0_5, %c0_6], %5 {strides = array<i32>} : memref<16x32xbf16, #tpu.memory_space<vmem>>, vector<16x32xbf16>,
    return
  }
  func.func @transform_0(%arg0: i32) -> (i32, i32) {
    %c0_i32 = arith.constant 0 : i32
    %c0_i32_0 = arith.constant 0 : i32
    return %arg0, %c0_i32 : i32, i32
  }
  func.func @transform_1(%arg0: i32) -> (i32, i32) {
    %c0_i32 = arith.constant 0 : i32
    %c0_i32_0 = arith.constant 0 : i32
    %c0_i32_1 = arith.constant 0 : i32
    return %c0_i32, %c0_i32_0 : i32, i32
  }
  func.func @transform_2(%arg0: i32) -> (i32, i32) {
    %c0_i32 = arith.constant 0 : i32
    %c0_i32_0 = arith.constant 0 : i32
    return %arg0, %c0_i32 : i32, i32
  }
  func.func @transform_3(%arg0: i32) -> (i32, i32) {
    %c0_i32 = arith.constant 0 : i32
    %c0_i32_0 = arith.constant 0 : i32
    return %arg0, %c0_i32 : i32, i32
  }
}

module attributes {stable_mosaic.version = 11 : i64} {
  func.func @_flash_mha_kernel(%arg0: i32, %arg1: i32, %arg2: i32, %arg3: i32, %arg4: memref<1x1x8x8xbf16, #tpu.memory_space<vmem>>, %arg5: memref<1x1x8x8xbf16, #tpu.memory_space<vmem>>, %arg6: memref<1x1x8x8xbf16, #tpu.memory_space<vmem>>, %arg7: memref<1x1x8x8xbf16, #tpu.memory_space<vmem>>, %arg8: memref<8x1xf32, #tpu.memory_space<vmem>>, %arg9: memref<8x1xf32, #tpu.memory_space<vmem>>, %arg10: memref<8x8xf32, #tpu.memory_space<vmem>>) attributes {dimension_semantics = [#tpu.dimension_semantics<parallel>, #tpu.dimension_semantics<parallel>, #tpu.dimension_semantics<parallel>, #tpu.dimension_semantics<arbitrary>], iteration_bounds = array<i64: 2, 4, 1, 1>, scalar_prefetch = 0 : i64, scratch_operands = 3 : i64, tpu.core_type = #tpu.core_type<tc>, window_params = [{transform_indices = @transform_0, window_bounds = array<i64: 1, 1, 8, 8>}, {transform_indices = @transform_1, window_bounds = array<i64: 1, 1, 8, 8>}, {transform_indices = @transform_2, window_bounds = array<i64: 1, 1, 8, 8>}, {transform_indices = @transform_3, window_bounds = array<i64: 1, 1, 8, 8>}]} {
    %c0_i32 = arith.constant 0 : i32
    %0 = arith.cmpi eq, %arg3, %c0_i32 : i32
    %1 = arith.extui %0 : i1 to i32
    %c0_i32_0 = arith.constant 0 : i32
    %2 = arith.cmpi ne, %1, %c0_i32_0 : i32
    scf.if %2 {
      %cst_30 = arith.constant 0xFF800000 : f32
      %38 = vector.broadcast %cst_30 : f32 to vector<8x1xf32>
      %c0_31 = arith.constant 0 : index
      %c0_32 = arith.constant 0 : index
      %39 = vector.load %arg8[%c0_31, %c0_32] : memref<8x1xf32, #tpu.memory_space<vmem>>, vector<8x1xf32>
      tpu.vector_store %arg8[%c0_31, %c0_32], %38 {strides = array<i32>} : memref<8x1xf32, #tpu.memory_space<vmem>>, vector<8x1xf32>,
      %cst_33 = arith.constant 0.000000e+00 : f32
      %40 = vector.broadcast %cst_33 : f32 to vector<8x1xf32>
      %c0_34 = arith.constant 0 : index
      %c0_35 = arith.constant 0 : index
      %41 = vector.load %arg9[%c0_34, %c0_35] : memref<8x1xf32, #tpu.memory_space<vmem>>, vector<8x1xf32>
      tpu.vector_store %arg9[%c0_34, %c0_35], %40 {strides = array<i32>} : memref<8x1xf32, #tpu.memory_space<vmem>>, vector<8x1xf32>,
      %cst_36 = arith.constant 0.000000e+00 : f32
      %42 = vector.broadcast %cst_36 : f32 to vector<8x8xf32>
      %c0_37 = arith.constant 0 : index
      %c0_38 = arith.constant 0 : index
      %43 = vector.load %arg10[%c0_37, %c0_38] : memref<8x8xf32, #tpu.memory_space<vmem>>, vector<8x8xf32>
      tpu.vector_store %arg10[%c0_37, %c0_38], %42 {strides = array<i32>} : memref<8x8xf32, #tpu.memory_space<vmem>>, vector<8x8xf32>,
    } else {
    }
    %c0 = arith.constant 0 : index
    %c0_1 = arith.constant 0 : index
    %c0_2 = arith.constant 0 : index
    %c0_3 = arith.constant 0 : index
    %3 = vector.load %arg4[%c0, %c0_1, %c0_2, %c0_3] : memref<1x1x8x8xbf16, #tpu.memory_space<vmem>>, vector<1x1x8x8xbf16>
    %4 = vector.shape_cast %3 : vector<1x1x8x8xbf16> to vector<8x8xbf16>
    %c0_4 = arith.constant 0 : index
    %c0_5 = arith.constant 0 : index
    %c0_6 = arith.constant 0 : index
    %c0_7 = arith.constant 0 : index
    %5 = vector.load %arg5[%c0_4, %c0_5, %c0_6, %c0_7] : memref<1x1x8x8xbf16, #tpu.memory_space<vmem>>, vector<1x1x8x8xbf16>
    %6 = vector.shape_cast %5 : vector<1x1x8x8xbf16> to vector<8x8xbf16>
    %c0_8 = arith.constant 0 : index
    %c0_9 = arith.constant 0 : index
    %c0_10 = arith.constant 0 : index
    %c0_11 = arith.constant 0 : index
    %7 = vector.load %arg6[%c0_8, %c0_9, %c0_10, %c0_11] : memref<1x1x8x8xbf16, #tpu.memory_space<vmem>>, vector<1x1x8x8xbf16>
    %8 = vector.shape_cast %7 : vector<1x1x8x8xbf16> to vector<8x8xbf16>
    %cst = arith.constant dense<0.000000e+00> : vector<8x8xf32>
    %9 = tpu.matmul %4, %6, %cst {dimension_numbers = #tpu.dot_dimension_numbers<[1], [1], [0], [0], [0, 0, 1, 0], [], []>} : vector<8x8xbf16>, vector<8x8xbf16>, vector<8x8xf32> -> vector<8x8xf32>
    %cst_12 = arith.constant 0.353553385 : f32
    %10 = vector.broadcast %cst_12 : f32 to vector<8x8xf32>
    %11 = arith.mulf %9, %10 : vector<8x8xf32>
    %c0_13 = arith.constant 0 : index
    %c0_14 = arith.constant 0 : index
    %12 = vector.load %arg8[%c0_13, %c0_14] : memref<8x1xf32, #tpu.memory_space<vmem>>, vector<8x1xf32>
    %cst_15 = arith.constant dense<0xFF800000> : vector<8xf32>
    %13 = vector.multi_reduction <maximumf>, %11, %cst_15 [1] : vector<8x8xf32> to vector<8xf32>
    %14 = vector.shape_cast %13 : vector<8xf32> to vector<8x1xf32>
    %15 = arith.maximumf %12, %14 : vector<8x1xf32>
    %16 = arith.subf %12, %15 : vector<8x1xf32>
    %17 = math.exp %16 : vector<8x1xf32>
    %18 = vector.broadcast %15 : vector<8x1xf32> to vector<8x8xf32>
    %19 = arith.subf %11, %18 : vector<8x8xf32>
    %20 = math.exp %19 : vector<8x8xf32>
    %c0_16 = arith.constant 0 : index
    %c0_17 = arith.constant 0 : index
    %21 = vector.load %arg9[%c0_16, %c0_17] : memref<8x1xf32, #tpu.memory_space<vmem>>, vector<8x1xf32>
    %22 = arith.mulf %17, %21 : vector<8x1xf32>
    %cst_18 = arith.constant dense<0.000000e+00> : vector<8xf32>
    %23 = vector.multi_reduction <add>, %20, %cst_18 [1] : vector<8x8xf32> to vector<8xf32>
    %24 = vector.shape_cast %23 : vector<8xf32> to vector<8x1xf32>
    %25 = arith.addf %22, %24 : vector<8x1xf32>
    %c0_19 = arith.constant 0 : index
    %c0_20 = arith.constant 0 : index
    %26 = vector.load %arg9[%c0_19, %c0_20] : memref<8x1xf32, #tpu.memory_space<vmem>>, vector<8x1xf32>
    tpu.vector_store %arg9[%c0_19, %c0_20], %25 {strides = array<i32>} : memref<8x1xf32, #tpu.memory_space<vmem>>, vector<8x1xf32>,
    %c0_21 = arith.constant 0 : index
    %c0_22 = arith.constant 0 : index
    %27 = vector.load %arg10[%c0_21, %c0_22] : memref<8x8xf32, #tpu.memory_space<vmem>>, vector<8x8xf32>
    %28 = vector.broadcast %17 : vector<8x1xf32> to vector<8x8xf32>
    %29 = arith.mulf %28, %27 : vector<8x8xf32>
    %30 = arith.truncf %20 : vector<8x8xf32> to vector<8x8xbf16>
    %cst_23 = arith.constant dense<0.000000e+00> : vector<8x8xf32>
    %31 = tpu.matmul %30, %8, %cst_23 {dimension_numbers = #tpu.dot_dimension_numbers<[1], [0], [0], [1], [0, 0, 1, 1], [], []>} : vector<8x8xbf16>, vector<8x8xbf16>, vector<8x8xf32> -> vector<8x8xf32>
    %32 = arith.addf %29, %31 : vector<8x8xf32>
    %c0_24 = arith.constant 0 : index
    %c0_25 = arith.constant 0 : index
    %33 = vector.load %arg10[%c0_24, %c0_25] : memref<8x8xf32, #tpu.memory_space<vmem>>, vector<8x8xf32>
    tpu.vector_store %arg10[%c0_24, %c0_25], %32 {strides = array<i32>} : memref<8x8xf32, #tpu.memory_space<vmem>>, vector<8x8xf32>,
    %c0_26 = arith.constant 0 : index
    %c0_27 = arith.constant 0 : index
    %34 = vector.load %arg8[%c0_26, %c0_27] : memref<8x1xf32, #tpu.memory_space<vmem>>, vector<8x1xf32>
    tpu.vector_store %arg8[%c0_26, %c0_27], %15 {strides = array<i32>} : memref<8x1xf32, #tpu.memory_space<vmem>>, vector<8x1xf32>,
    %c0_i32_28 = arith.constant 0 : i32
    %35 = arith.cmpi eq, %arg3, %c0_i32_28 : i32
    %36 = arith.extui %35 : i1 to i32
    %c0_i32_29 = arith.constant 0 : i32
    %37 = arith.cmpi ne, %36, %c0_i32_29 : i32
    scf.if %37 {
      %c0_30 = arith.constant 0 : index
      %c0_31 = arith.constant 0 : index
      %38 = vector.load %arg10[%c0_30, %c0_31] : memref<8x8xf32, #tpu.memory_space<vmem>>, vector<8x8xf32>
      %c0_32 = arith.constant 0 : index
      %c0_33 = arith.constant 0 : index
      %39 = vector.load %arg9[%c0_32, %c0_33] : memref<8x1xf32, #tpu.memory_space<vmem>>, vector<8x1xf32>
      %40 = vector.broadcast %39 : vector<8x1xf32> to vector<8x8xf32>
      %41 = arith.divf %38, %40 : vector<8x8xf32>
      %42 = arith.truncf %41 : vector<8x8xf32> to vector<8x8xbf16>
      %c0_34 = arith.constant 0 : index
      %c0_35 = arith.constant 0 : index
      %c0_36 = arith.constant 0 : index
      %c0_37 = arith.constant 0 : index
      %43 = vector.load %arg7[%c0_34, %c0_35, %c0_36, %c0_37] : memref<1x1x8x8xbf16, #tpu.memory_space<vmem>>, vector<1x1x8x8xbf16>
      %44 = vector.shape_cast %43 : vector<1x1x8x8xbf16> to vector<8x8xbf16>
      %45 = vector.shape_cast %42 : vector<8x8xbf16> to vector<1x1x8x8xbf16>
      tpu.vector_store %arg7[%c0_34, %c0_35, %c0_36, %c0_37], %45 {strides = array<i32>} : memref<1x1x8x8xbf16, #tpu.memory_space<vmem>>, vector<1x1x8x8xbf16>,
    } else {
    }
    return
  }
  func.func @transform_0(%arg0: i32, %arg1: i32, %arg2: i32, %arg3: i32) -> (i32, i32, i32, i32) {
    %c0_i32 = arith.constant 0 : i32
    %c0_i32_0 = arith.constant 0 : i32
    return %arg0, %arg1, %arg2, %c0_i32 : i32, i32, i32, i32
  }
  func.func @transform_1(%arg0: i32, %arg1: i32, %arg2: i32, %arg3: i32) -> (i32, i32, i32, i32) {
    %c0_i32 = arith.constant 0 : i32
    %c0_i32_0 = arith.constant 0 : i32
    return %arg0, %arg1, %arg3, %c0_i32 : i32, i32, i32, i32
  }
  func.func @transform_2(%arg0: i32, %arg1: i32, %arg2: i32, %arg3: i32) -> (i32, i32, i32, i32) {
    %c0_i32 = arith.constant 0 : i32
    %c0_i32_0 = arith.constant 0 : i32
    return %arg0, %arg1, %arg3, %c0_i32 : i32, i32, i32, i32
  }
  func.func @transform_3(%arg0: i32, %arg1: i32, %arg2: i32, %arg3: i32) -> (i32, i32, i32, i32) {
    %c0_i32 = arith.constant 0 : i32
    %c0_i32_0 = arith.constant 0 : i32
    return %arg0, %arg1, %arg2, %c0_i32 : i32, i32, i32, i32
  }
}

module attributes {stable_mosaic.version = 11 : i64} {
  func.func @_fused_linear_kernel(%arg0: i32, %arg1: memref<16x32xbf16, #tpu.memory_space<vmem>>, %arg2: memref<32x32xbf16, #tpu.memory_space<vmem>>, %arg3: memref<1x32xf32, #tpu.memory_space<vmem>>, %arg4: memref<16x32xbf16, #tpu.memory_space<vmem>>, %arg5: memref<1x32xf32, #tpu.memory_space<vmem>>, %arg6: memref<1x32xf32, #tpu.memory_space<vmem>>, %arg7: memref<16x32xbf16, #tpu.memory_space<vmem>>) attributes {dimension_semantics = [#tpu.dimension_semantics<parallel>], iteration_bounds = array<i64: 1>, scalar_prefetch = 0 : i64, scratch_operands = 0 : i64, tpu.core_type = #tpu.core_type<tc>, window_params = [{transform_indices = @transform_0, window_bounds = array<i64: 16, 32>}, {pipeline_mode = #tpu.pipeline_mode<synchronous>, transform_indices = @transform_1, window_bounds = array<i64: 32, 32>}, {pipeline_mode = #tpu.pipeline_mode<synchronous>, transform_indices = @transform_2, window_bounds = array<i64: 1, 32>}, {transform_indices = @transform_3, window_bounds = array<i64: 16, 32>}, {pipeline_mode = #tpu.pipeline_mode<synchronous>, transform_indices = @transform_4, window_bounds = array<i64: 1, 32>}, {pipeline_mode = #tpu.pipeline_mode<synchronous>, transform_indices = @transform_5, window_bounds = array<i64: 1, 32>}, {transform_indices = @transform_6, window_bounds = array<i64: 16, 32>}]} {
    %c0 = arith.constant 0 : index
    %c0_0 = arith.constant 0 : index
    %0 = vector.load %arg1[%c0, %c0_0] : memref<16x32xbf16, #tpu.memory_space<vmem>>, vector<16x32xbf16>
    %c0_1 = arith.constant 0 : index
    %c0_2 = arith.constant 0 : index
    %1 = vector.load %arg2[%c0_1, %c0_2] : memref<32x32xbf16, #tpu.memory_space<vmem>>, vector<32x32xbf16>
    %cst = arith.constant dense<0.000000e+00> : vector<16x32xf32>
    %2 = tpu.matmul %0, %1, %cst {dimension_numbers = #tpu.dot_dimension_numbers<[1], [0], [0], [1], [0, 0, 1, 1], [], []>} : vector<16x32xbf16>, vector<32x32xbf16>, vector<16x32xf32> -> vector<16x32xf32>
    %c0_3 = arith.constant 0 : index
    %c0_4 = arith.constant 0 : index
    %3 = vector.load %arg3[%c0_3, %c0_4] : memref<1x32xf32, #tpu.memory_space<vmem>>, vector<1x32xf32>
    %4 = vector.broadcast %3 : vector<1x32xf32> to vector<16x32xf32>
    %5 = arith.addf %2, %4 : vector<16x32xf32>
    %c0_5 = arith.constant 0 : index
    %c0_6 = arith.constant 0 : index
    %6 = vector.load %arg4[%c0_5, %c0_6] : memref<16x32xbf16, #tpu.memory_space<vmem>>, vector<16x32xbf16>
    %7 = arith.extf %6 : vector<16x32xbf16> to vector<16x32xf32>
    %8 = arith.addf %5, %7 : vector<16x32xf32>
    %cst_7 = arith.constant dense<0.000000e+00> : vector<16xf32>
    %9 = vector.multi_reduction <add>, %8, %cst_7 [1] : vector<16x32xf32> to vector<16xf32>
    %10 = vector.shape_cast %9 : vector<16xf32> to vector<16x1xf32>
    %cst_8 = arith.constant 3.200000e+01 : f32
    %11 = vector.broadcast %cst_8 : f32 to vector<16x1xf32>
    %12 = arith.divf %10, %11 : vector<16x1xf32>
    %13 = vector.broadcast %12 : vector<16x1xf32> to vector<16x32xf32>
    %14 = arith.subf %8, %13 : vector<16x32xf32>
    %15 = arith.mulf %14, %14 : vector<16x32xf32>
    %cst_9 = arith.constant dense<0.000000e+00> : vector<16xf32>
    %16 = vector.multi_reduction <add>, %15, %cst_9 [1] : vector<16x32xf32> to vector<16xf32>
    %17 = vector.shape_cast %16 : vector<16xf32> to vector<16x1xf32>
    %cst_10 = arith.constant 3.200000e+01 : f32
    %18 = vector.broadcast %cst_10 : f32 to vector<16x1xf32>
    %19 = arith.divf %17, %18 : vector<16x1xf32>
    %20 = vector.broadcast %12 : vector<16x1xf32> to vector<16x32xf32>
    %21 = arith.subf %8, %20 : vector<16x32xf32>
    %cst_11 = arith.constant 9.99999974E-6 : f32
    %22 = vector.broadcast %cst_11 : f32 to vector<16x1xf32>
    %23 = arith.addf %19, %22 : vector<16x1xf32>
    %24 = math.rsqrt %23 : vector<16x1xf32>
    %25 = vector.broadcast %24 : vector<16x1xf32> to vector<16x32xf32>
    %26 = arith.mulf %21, %25 : vector<16x32xf32>
    %c0_12 = arith.constant 0 : index
    %c0_13 = arith.constant 0 : index
    %27 = vector.load %arg5[%c0_12, %c0_13] : memref<1x32xf32, #tpu.memory_space<vmem>>, vector<1x32xf32>
    %28 = vector.broadcast %27 : vector<1x32xf32> to vector<16x32xf32>
    %29 = arith.mulf %26, %28 : vector<16x32xf32>
    %c0_14 = arith.constant 0 : index
    %c0_15 = arith.constant 0 : index
    %30 = vector.load %arg6[%c0_14, %c0_15] : memref<1x32xf32, #tpu.memory_space<vmem>>, vector<1x32xf32>
    %31 = vector.broadcast %30 : vector<1x32xf32> to vector<16x32xf32>
    %32 = arith.addf %29, %31 : vector<16x32xf32>
    %33 = arith.truncf %32 : vector<16x32xf32> to vector<16x32xbf16>
    %c0_16 = arith.constant 0 : index
    %c0_17 = arith.constant 0 : index
    %34 = vector.load %arg7[%c0_16, %c0_17] : memref<16x32xbf16, #tpu.memory_space<vmem>>, vector<16x32xbf16>
    tpu.vector_store %arg7[%c0_16, %c0_17], %33 {strides = array<i32>} : memref<16x32xbf16, #tpu.memory_space<vmem>>, vector<16x32xbf16>,
    return
  }
  func.func @transform_0(%arg0: i32) -> (i32, i32) {
    %c0_i32 = arith.constant 0 : i32
    %c0_i32_0 = arith.constant 0 : i32
    return %arg0, %c0_i32 : i32, i32
  }
  func.func @transform_1(%arg0: i32) -> (i32, i32) {
    %c0_i32 = arith.constant 0 : i32
    %c0_i32_0 = arith.constant 0 : i32
    %c0_i32_1 = arith.constant 0 : i32
    return %c0_i32, %c0_i32_0 : i32, i32
  }
  func.func @transform_2(%arg0: i32) -> (i32, i32) {
    %c0_i32 = arith.constant 0 : i32
    %c0_i32_0 = arith.constant 0 : i32
    %c0_i32_1 = arith.constant 0 : i32
    return %c0_i32, %c0_i32_0 : i32, i32
  }
  func.func @transform_3(%arg0: i32) -> (i32, i32) {
    %c0_i32 = arith.constant 0 : i32
    %c0_i32_0 = arith.constant 0 : i32
    return %arg0, %c0_i32 : i32, i32
  }
  func.func @transform_4(%arg0: i32) -> (i32, i32) {
    %c0_i32 = arith.constant 0 : i32
    %c0_i32_0 = arith.constant 0 : i32
    %c0_i32_1 = arith.constant 0 : i32
    return %c0_i32, %c0_i32_0 : i32, i32
  }
  func.func @transform_5(%arg0: i32) -> (i32, i32) {
    %c0_i32 = arith.constant 0 : i32
    %c0_i32_0 = arith.constant 0 : i32
    %c0_i32_1 = arith.constant 0 : i32
    return %c0_i32, %c0_i32_0 : i32, i32
  }
  func.func @transform_6(%arg0: i32) -> (i32, i32) {
    %c0_i32 = arith.constant 0 : i32
    %c0_i32_0 = arith.constant 0 : i32
    return %arg0, %c0_i32 : i32, i32
  }
}

module attributes {stable_mosaic.version = 11 : i64} {
  func.func @_fused_linear_kernel(%arg0: i32, %arg1: memref<16x32xbf16, #tpu.memory_space<vmem>>, %arg2: memref<32x32xbf16, #tpu.memory_space<vmem>>, %arg3: memref<1x32xf32, #tpu.memory_space<vmem>>, %arg4: memref<16x32xbf16, #tpu.memory_space<vmem>>) attributes {dimension_semantics = [#tpu.dimension_semantics<parallel>], iteration_bounds = array<i64: 1>, scalar_prefetch = 0 : i64, scratch_operands = 0 : i64, tpu.core_type = #tpu.core_type<tc>, window_params = [{transform_indices = @transform_0, window_bounds = array<i64: 16, 32>}, {pipeline_mode = #tpu.pipeline_mode<synchronous>, transform_indices = @transform_1, window_bounds = array<i64: 32, 32>}, {pipeline_mode = #tpu.pipeline_mode<synchronous>, transform_indices = @transform_2, window_bounds = array<i64: 1, 32>}, {transform_indices = @transform_3, window_bounds = array<i64: 16, 32>}]} {
    %c0 = arith.constant 0 : index
    %c0_0 = arith.constant 0 : index
    %0 = vector.load %arg1[%c0, %c0_0] : memref<16x32xbf16, #tpu.memory_space<vmem>>, vector<16x32xbf16>
    %c0_1 = arith.constant 0 : index
    %c0_2 = arith.constant 0 : index
    %1 = vector.load %arg2[%c0_1, %c0_2] : memref<32x32xbf16, #tpu.memory_space<vmem>>, vector<32x32xbf16>
    %cst = arith.constant dense<0.000000e+00> : vector<16x32xf32>
    %2 = tpu.matmul %0, %1, %cst {dimension_numbers = #tpu.dot_dimension_numbers<[1], [0], [0], [1], [0, 0, 1, 1], [], []>} : vector<16x32xbf16>, vector<32x32xbf16>, vector<16x32xf32> -> vector<16x32xf32>
    %c0_3 = arith.constant 0 : index
    %c0_4 = arith.constant 0 : index
    %3 = vector.load %arg3[%c0_3, %c0_4] : memref<1x32xf32, #tpu.memory_space<vmem>>, vector<1x32xf32>
    %4 = vector.broadcast %3 : vector<1x32xf32> to vector<16x32xf32>
    %5 = arith.addf %2, %4 : vector<16x32xf32>
    %cst_5 = arith.constant 0.000000e+00 : f32
    %6 = vector.broadcast %cst_5 : f32 to vector<16x32xf32>
    %7 = arith.maximumf %5, %6 : vector<16x32xf32>
    %8 = arith.truncf %7 : vector<16x32xf32> to vector<16x32xbf16>
    %c0_6 = arith.constant 0 : index
    %c0_7 = arith.constant 0 : index
    %9 = vector.load %arg4[%c0_6, %c0_7] : memref<16x32xbf16, #tpu.memory_space<vmem>>, vector<16x32xbf16>
    tpu.vector_store %arg4[%c0_6, %c0_7], %8 {strides = array<i32>} : memref<16x32xbf16, #tpu.memory_space<vmem>>, vector<16x32xbf16>,
    return
  }
  func.func @transform_0(%arg0: i32) -> (i32, i32) {
    %c0_i32 = arith.constant 0 : i32
    %c0_i32_0 = arith.constant 0 : i32
    return %arg0, %c0_i32 : i32, i32
  }
  func.func @transform_1(%arg0: i32) -> (i32, i32) {
    %c0_i32 = arith.constant 0 : i32
    %c0_i32_0 = arith.constant 0 : i32
    %c0_i32_1 = arith.constant 0 : i32
    return %c0_i32, %c0_i32_0 : i32, i32
  }
  func.func @transform_2(%arg0: i32) -> (i32, i32) {
    %c0_i32 = arith.constant 0 : i32
    %c0_i32_0 = arith.constant 0 : i32
    %c0_i32_1 = arith.constant 0 : i32
    return %c0_i32, %c0_i32_0 : i32, i32
  }
  func.func @transform_3(%arg0: i32) -> (i32, i32) {
    %c0_i32 = arith.constant 0 : i32
    %c0_i32_0 = arith.constant 0 : i32
    return %arg0, %c0_i32 : i32, i32
  }
}

module attributes {stable_mosaic.version = 11 : i64} {
  func.func @_fused_linear_kernel(%arg0: i32, %arg1: memref<16x32xbf16, #tpu.memory_space<vmem>>, %arg2: memref<32x128xbf16, #tpu.memory_space<vmem>>, %arg3: memref<1x128xf32, #tpu.memory_space<vmem>>, %arg4: memref<16x128xf32, #tpu.memory_space<vmem>>) attributes {dimension_semantics = [#tpu.dimension_semantics<parallel>], iteration_bounds = array<i64: 1>, scalar_prefetch = 0 : i64, scratch_operands = 0 : i64, tpu.core_type = #tpu.core_type<tc>, window_params = [{transform_indices = @transform_0, window_bounds = array<i64: 16, 32>}, {pipeline_mode = #tpu.pipeline_mode<synchronous>, transform_indices = @transform_1, window_bounds = array<i64: 32, 128>}, {pipeline_mode = #tpu.pipeline_mode<synchronous>, transform_indices = @transform_2, window_bounds = array<i64: 1, 128>}, {transform_indices = @transform_3, window_bounds = array<i64: 16, 128>}]} {
    %c0 = arith.constant 0 : index
    %c0_0 = arith.constant 0 : index
    %0 = vector.load %arg1[%c0, %c0_0] : memref<16x32xbf16, #tpu.memory_space<vmem>>, vector<16x32xbf16>
    %c0_1 = arith.constant 0 : index
    %c0_2 = arith.constant 0 : index
    %1 = vector.load %arg2[%c0_1, %c0_2] : memref<32x128xbf16, #tpu.memory_space<vmem>>, vector<32x128xbf16>
    %cst = arith.constant dense<0.000000e+00> : vector<16x128xf32>
    %2 = tpu.matmul %0, %1, %cst {dimension_numbers = #tpu.dot_dimension_numbers<[1], [0], [0], [1], [0, 0, 1, 1], [], []>} : vector<16x32xbf16>, vector<32x128xbf16>, vector<16x128xf32> -> vector<16x128xf32>
    %c0_3 = arith.constant 0 : index
    %c0_4 = arith.constant 0 : index
    %3 = vector.load %arg3[%c0_3, %c0_4] : memref<1x128xf32, #tpu.memory_space<vmem>>, vector<1x128xf32>
    %4 = vector.broadcast %3 : vector<1x128xf32> to vector<16x128xf32>
    %5 = arith.addf %2, %4 : vector<16x128xf32>
    %c0_5 = arith.constant 0 : index
    %c0_6 = arith.constant 0 : index
    %6 = vector.load %arg4[%c0_5, %c0_6] : memref<16x128xf32, #tpu.memory_space<vmem>>, vector<16x128xf32>
    tpu.vector_store %arg4[%c0_5, %c0_6], %5 {strides = array<i32>} : memref<16x128xf32, #tpu.memory_space<vmem>>, vector<16x128xf32>,
    return
  }
  func.func @transform_0(%arg0: i32) -> (i32, i32) {
    %c0_i32 = arith.constant 0 : i32
    %c0_i32_0 = arith.constant 0 : i32
    return %arg0, %c0_i32 : i32, i32
  }
  func.func @transform_1(%arg0: i32) -> (i32, i32) {
    %c0_i32 = arith.constant 0 : i32
    %c0_i32_0 = arith.constant 0 : i32
    %c0_i32_1 = arith.constant 0 : i32
    return %c0_i32, %c0_i32_0 : i32, i32
  }
  func.func @transform_2(%arg0: i32) -> (i32, i32) {
    %c0_i32 = arith.constant 0 : i32
    %c0_i32_0 = arith.constant 0 : i32
    %c0_i32_1 = arith.constant 0 : i32
    return %c0_i32, %c0_i32_0 : i32, i32
  }
  func.func @transform_3(%arg0: i32) -> (i32, i32) {
    %c0_i32 = arith.constant 0 : i32
    %c0_i32_0 = arith.constant 0 : i32
    return %arg0, %c0_i32 : i32, i32
  }
}

</mosaic_0001>

<bundles_post_ra>
// kernel: transformer_forward.13
= control target key start
LH: loop header
LB: loop body
LE: loop exit
PB: predicated region body
PF: predicated region fallthrough
CT: control target
= control target key end

     0   :  { %v130_v0 = vmov 0.0   ;;  %vm131_vm0 = vmmov 0   ;;  %vm45_vm1 = vcmask 261120   ;;  %vm98_vm2 = vcmask 781312   ;;  %s170_s1 = inlined_call_operand.vmem [shape: bf16[32,96], index: 1, kind: input, shape index: {}]   ;;  %s171_s0 = inlined_call_operand.vmem [shape: bf16[16,32], index: 0, kind: input, shape index: {}]   ;;  %s172_s2 = inlined_call_operand.vmem [shape: f32[1,96], index: 2, kind: input, shape index: {}]   ;;  %s173_s3 = inlined_call_operand.vmem [shape: bf16[16,96], index: 3, kind: output, shape index: {}]  }
   0x1   :  { %117 = vmatprep.subr.bf16.mxu0 %v130_v0  ;;  %v127_v1 = vld [vmem:[%s170_s1 + $0x8] sm:$0xff]   ;;  %121 = vmatprep.mubr.msk.bf16.mxu0 %vm131_vm0, %v130_v0  ;;  %v128_v2 = vld [vmem:[%s170_s1] sm:$0xff]  }
   0x2   :  { %118 = vmatpush3.bf16.msra.mxu0 %v127_v1  ;;  %v129_v3 = vld [vmem:[%s171_s0] sm:$0xff]  }
   0x3   :  { %119 = vmatprep.subr.bf16.mxu0 %v130_v0  ;;  %v105_v4 = vld [vmem:[%s172_s2] ss:$0 sm:$0xff] }
   0x6   :  { %120 = vmatpush3.bf16.msra.mxu0 %v128_v2 }
   0x9   :  { %122 = vmatmul.mubr.msk.bf16.vlgmr.msra.gmra.mxu0 %vm45_vm1, %v129_v3 }
  0xc9   :  { %v83_v5 = vpop.f32.mrf.mxu0 }
  0xca   :  { %v84_v6 = vadd.f32 %v105_v4, %v83_v5 }
  0xcb   :  { %v123_v7 = vpop.f32.mrf.mxu0 }
  0xcc   :  { %v112_v8 = vpack.c.bf16 %v84_v6, %v84_v6 }
  0xcd   :  { %v86_v9 = vpop.f32.mrf.mxu0 }
  0xce   :  { %99 = vst.msk [vmem:[%s173_s3] sm:$0xf] %vm98_vm2, %v112_v8  ;;  %v87_v10 = vadd.f32 %v105_v4, %v86_v9 }
  0xcf   :  { %v124_v11 = vpop.f32.mrf.mxu0 }
  0xd0   :  { %v113_v12 = vpack.c.bf16 %v87_v10, %v87_v10 }
  0xd2   :  { %100 = vst.msk [vmem:[%s173_s3 + $0x4] sm:$0xf] %vm98_vm2, %v113_v12 }

// kernel: transformer_forward.12
= control target key start
LH: loop header
LB: loop body
LE: loop exit
PB: predicated region body
PF: predicated region fallthrough
CT: control target
= control target key end

     0   :  { %v111_v0 = vmov 0.0   ;;  %vm112_vm0 = vmmov 0   ;;  %vm32_vm1 = vcmask 130048   ;;  %vm85_vm2 = vcmask 257024   ;;  %s151_s1 = inlined_call_operand.vmem [shape: bf16[16,32], index: 1, kind: input, shape index: {}]   ;;  %s152_s0 = inlined_call_operand.vmem [shape: bf16[16,16], index: 0, kind: input, shape index: {}]   ;;  %s153_s2 = inlined_call_operand.vmem [shape: f32[16,32], index: 2, kind: input, shape index: {}]   ;;  %s154_s3 = inlined_call_operand.vmem [shape: bf16[16,32], index: 3, kind: output, shape index: {}]  }
   0x1   :  { %101 = vmatprep.subr.bf16.mxu0 %v111_v0  ;;  %v109_v1 = vld [vmem:[%s151_s1] sm:$0xff]   ;;  %103 = vmatprep.mubr.msk.bf16.mxu0 %vm112_vm0, %v111_v0  ;;  %v20_v7 = vld [vmem:[%s153_s2 + $0x8] sm:$0xff] }
   0x2   :  { %v110_v2 = vld [vmem:[%s152_s0] sm:$0xff]   ;;  %102 = vmatpush3.bf16.msra.mxu0 %v109_v1 }
   0x3   :  { %v19_v3 = vld [vmem:[%s153_s2] sm:$0xff] }
   0x5   :  { %104 = vmatmul.mubr.msk.bf16.vlgmr.msra.gmra.mxu0 %vm32_vm1, %v110_v2 }
  0xc5   :  { %v70_v4 = vpop.f32.mrf.mxu0 }
  0xc6   :  { %v71_v5 = vadd.f32 %v70_v4, %v19_v3 }
  0xc7   :  { %v105_v6 = vpop.f32.mrf.mxu0 }
  0xc8   :  { %v97_v8 = vpack.c.bf16 %v71_v5, %v71_v5 }
  0xc9   :  { %v73_v9 = vpop.f32.mrf.mxu0 }
  0xca   :  { %86 = vst.msk [vmem:[%s154_s3] sm:$0xf] %vm85_vm2, %v97_v8  ;;  %v74_v10 = vadd.f32 %v73_v9, %v20_v7 }
  0xcb   :  { %v106_v11 = vpop.f32.mrf.mxu0 }
  0xcc   :  { %v98_v12 = vpack.c.bf16 %v74_v10, %v74_v10 }
  0xce   :  { %87 = vst.msk [vmem:[%s154_s3 + $0x4] sm:$0xf] %vm85_vm2, %v98_v12 }

// kernel: transformer_forward.14
= control target key start
LH: loop header
LB: loop body
LE: loop exit
PB: predicated region body
PF: predicated region fallthrough
CT: control target
= control target key end

     0   :  { %s773_s12 = smov 0   ;;  %s775_s13 = smov 0   ;;  %s847_s0 = inlined_call_operand.vmem [shape: bf16[2,4,8,8], index: 0, kind: input, shape index: {}]   ;;  %s848_s1 = inlined_call_operand.vmem [shape: bf16[2,4,8,8], index: 1, kind: input, shape index: {}]   ;;  %s849_s2 = inlined_call_operand.vmem [shape: bf16[2,4,8,8], index: 2, kind: input, shape index: {}]   ;;  %s850_s3 = inlined_call_operand.vmem [shape: bf16[2,4,8,8], index: 3, kind: output, shape index: {}]  }
   0x1   :  { %s777_s14 = smov 0   ;;  %s779_s15 = smov 0  }
   0x2   :  { %s781_s16 = smov 0  }
   0x3 LB: > { %s35_s17 = sadd.s32 1, %s739_s14  ;;  %s39_s18 = sadd.s32 1, %s743_s15  ;;  %s747_s16 = sphi %s781_s16, %s13_s16   ;;  %s743_s15 = sphi %s779_s15, %s854_s15   ;;  %s739_s14 = sphi %s777_s14, %s853_s14   ;;  %s735_s13 = sphi %s775_s13, %s852_s13   ;;  %s731_s12 = sphi %s773_s12, %s851_s12  }
   0x4   : > { %p37_p0 = scmp.ge.s32.totalorder %s35_s17, 4  ;;  %p628_p1 = scmp.ge.s32.totalorder %s747_s16, 1 }
   0x5   : > { %p217_p2 = scmp.lt.s32.totalorder %s747_s16, 9 }
   0x6   : > { %s856_s17 = smov (%p37_p0, %s35_s17), 0  ;;  %s858_s18 = smov (!%p37_p0, %s39_s18), %s743_s15 }
   0x7   : > { %p218_p3 = pnand %p628_p1, %p217_p2  ;;  %p41_p4 = scmp.ge.s32.totalorder %s858_s18, 2 }
   0x8   : > { %p275_p5 = scmp.lt.s32.totalorder (!%p218_p3), %s735_s13, 1  ;;  %p277_p6 = scmp.lt.s32.totalorder (!%p218_p3), %s731_s12, 3 }
   0x9   : > { %s860_s18 = smov (%p41_p4, %s858_s18), 0  ;;  %221 = sbr.rel (%p218_p3) target bundleno = 800 (0x320), region = 32 }
   0xe   : > { %vm327_vm0 = vcmask 64512   ;;  %v749_v0 = vmov 0.0   ;;  %vm750_vm1 = vmmov 0   ;;  %s862_s13 = smov (!%p275_p5, %s735_s13), 1  ;;  %s864_s12 = smov (!%p277_p6, %s731_s12), 3  ;;  %vm324_vm2 = vcmask 7168  }
   0xf   : > { %645 = vmatprep.subr.bf16.mxu0 %v749_v0  ;;  %328 = vst.msk [vmem:[#allocation4] sm:$0xff] %vm327_vm0, %v749_v0  ;;  %647 = vmatprep.mubr.msk.bf16.mxu0 %vm750_vm1, %v749_v0  ;;  %s629_s19 = sshll.u32 %s862_s13, 2  ;;  %v751_v4 = vmov -inf   ;;  %v752_v11 = vmov 0   ;;  %vm415_vm3 = vcmask 1043456   ;;  %vm475_vm4 = vcmask 60416  }
  0x10   : > { %651 = vmatprep.subr.bf16.mxu1 %v749_v0  ;;  %653 = vmatprep.mubr.msk.bf16.mxu1 %vm750_vm1, %v749_v0  ;;  %s283_s20 = sadd.s32 %s629_s19, %s864_s12  ;;  %325 = vst.msk [vmem:[#allocation2] sm:$0xff] %vm324_vm2, %v751_v4  ;;  %326 = vst.msk [vmem:[#allocation3] sm:$0xff] %vm324_vm2, %v749_v0 }
  0x11   : > { %s804_s21 = sshll.u32 %s283_s20, 2  ;;  %701 = vset.pattern.permute.xlu0 %v752_v11  ;;  %702 = vset.pattern.permute.xlu1 %v752_v11 }
  0x12   : > { %s296_s24 = scalar_lea.vmem %s848_s1, %s804_s21  ;;  %s285_s27 = scalar_lea.vmem %s847_s0, %s804_s21 }
  0x13   : > { %v330_v1 = vld [vmem:[%s296_s24] sm:$0xf]  ;;  %s307_s30 = scalar_lea.vmem %s849_s2, %s804_s21  ;;  %s318_s6 = scalar_lea.vmem %s850_s3, %s804_s21 }
  0x14   : > { %v337_v2 = vsel %vm327_vm0, %v330_v1, 0  ;;  %v329_v3 = vld [vmem:[%s285_s27] sm:$0xf] }
  0x15   : > { %646 = vmatpush3.bf16.xpose.msra.mxu0 %v337_v2  ;;  %v331_v16 = vld [vmem:[%s307_s30] sm:$0xf] }
  0x16   : > { %v417_v17 = vsel %vm415_vm3, %v331_v16, 0  ;;  %v404_v36 = vld [vmem:[#allocation4] sm:$0xff] }
  0x17   : > { %v380_v12 = vld [vmem:[#allocation2] sm:$0xff]  ;;  %652 = vmatpush3.bf16.msra.mxu1 %v417_v17  ;;  %v396_v26 = vld [vmem:[#allocation3] sm:$0xff] }
  0x1c   : > { %648 = vmatmul.mubr.msk.bf16.vlgmr.msra.gmra.mxu0 %vm327_vm0, %v329_v3 }
  0xdc   : > { %v373_v5 = vpop.f32.mrf.mxu0 }
  0xdd   : > { %v379_v6 = vmul.f32 0.35355338, %v373_v5 }
  0xde   : > { %v649_v7 = vpop.f32.mrf.mxu0 }
  0xdf   : > { %v381_v8 = vsel %vm327_vm0, %v379_v6, -inf }
  0xe0   : > { %382 = vmax.xlane.f32.xlu0 %v381_v8  ;;  %v376_v9 = vpop.f32.mrf.mxu0 }
  0xe2   : > { %v650_v10 = vpop.f32.mrf.mxu0 }
 0x169   : > { %v383_v13 = vpop.xlane.xlu0 %382 }
 0x16a   : > { %v384_v14 = vmax.f32 %v380_v12, %v383_v13 }
 0x16c   : > { %v385_v15 = vsub.f32 %v380_v12, %v384_v14  ;;  %461 = vst.msk [vmem:[#allocation2] sm:$0xff] %vm324_vm2, %v384_v14  ;;  %390 = vperm.xlu0 %701, %v384_v14  }
 0x16e   : > { %v386_v24 = vmul.f32 1.442695, %v385_v15 }
 0x1e7   : > { %v391_v18 = vpop.permute.xlu0 %390 }
 0x1e8   : > { %v393_v19 = vsub.f32 %v379_v6, %v391_v18 }
 0x1ea   : > { %v394_v20 = vmul.f32 1.442695, %v393_v19 }
 0x1ec   : > { %703 = vpow2.f32 %v394_v20 }
 0x1ed   : > { %705 = vpow2.f32 %v386_v24 }
 0x1f9   : > { %v704_v21 = vpop.eup %703 }
 0x1fa   : > { %v398_v22 = vsel %vm327_vm0, %v704_v21, 0.0  ;;  %v411_v23 = vpack.c.bf16 %v704_v21, %v704_v21  ;;  %v706_v25 = vpop.eup %705 }
 0x1fb   : > { %399 = vadd.xlane.f32.xlu1 %v398_v22  ;;  %v397_v27 = vmul.f32 %v706_v25, %v396_v26 }
 0x1fc   : > { %654 = vmatmul.mubr.msk.bf16.vlgmr.msra.gmra.mxu1 %vm327_vm0, %v411_v23 }
 0x284   : > { %v400_v28 = vpop.xlane.xlu1 %399 }
 0x285   : > { %v401_v29 = vadd.f32 %v400_v28, %v397_v27 }
 0x287   : > { %403 = vst.msk [vmem:[#allocation3] sm:$0xff] %vm324_vm2, %v401_v29 }
 0x28e   : > { %v466_v30 = vld [vmem:[#allocation3] sm:$0xff] }
 0x28f   : > { %469 = vperm.xlu1 %702, %v466_v30  }
 0x293   : > { %407 = vperm.xlu1 %702, %v706_v25  }
 0x2bc   : > { %v453_v31 = vpop.f32.mrf.mxu1 }
 0x2be   : > { %v655_v32 = vpop.f32.mrf.mxu1 }
 0x2c0   : > { %v456_v33 = vpop.f32.mrf.mxu1 }
 0x2c2   : > { %v656_v34 = vpop.f32.mrf.mxu1 }
 0x30a   : > { %v470_v35 = vpop.permute.xlu1 %469 }
 0x30b   : > { %707 = vrcp.f32 %v470_v35 }
 0x30e   : > { %v408_v37 = vpop.permute.xlu1 %407 }
 0x30f   : > { %v410_v38 = vmul.f32 %v408_v37, %v404_v36 }
 0x311   : > { %v459_v39 = vadd.f32 %v453_v31, %v410_v38 }
 0x313   : > { %460 = vst.msk [vmem:[#allocation4] sm:$0xff] %vm327_vm0, %v459_v39 }
 0x318   : > { %v708_v40 = vpop.eup %707 }
 0x31a   : > { %v465_v41 = vld [vmem:[#allocation4] sm:$0xff] }
 0x31b   : > { %v473_v42 = vmul.f32 %v708_v40, %v465_v41 }
 0x31d   : > { %v474_v43 = vpack.c.bf16 %v473_v42, %v473_v42 }
 0x31f   : > { %476 = vst.msk [vmem:[%s318_s6] sm:$0xf] %vm475_vm4, %v474_v43 }
 0x320 PF: > { %s13_s16 = sadd.s32 1, %s747_s16   ;;  %s851_s12 = smov %s739_s14 }
 0x321   : > { %p10_p7 = scmp.ge.s32.totalorder %s13_s16, 10   ;;  %s852_s13 = smov %s743_s15 }
 0x322   : > { %s853_s14 = smov %s856_s17  ;;  %s854_s15 = smov %s860_s18 }
 0x323   :  { %12 = sbr.rel (!%p10_p7) target bundleno = 3 (0x3), region = 76 }

// kernel: transformer_forward.15
= control target key start
LH: loop header
LB: loop body
LE: loop exit
PB: predicated region body
PF: predicated region fallthrough
CT: control target
= control target key end

     0   :  { %v200_v0 = vmov 0.0   ;;  %vm201_vm0 = vmmov 0   ;;  %vm54_vm1 = vcmask 261120   ;;  %vm158_vm2 = vcmask 257024   ;;  %s269_s1 = inlined_call_operand.vmem [shape: bf16[32,32], index: 1, kind: input, shape index: {}]   ;;  %s270_s0 = inlined_call_operand.vmem [shape: bf16[16,32], index: 0, kind: input, shape index: {}]   ;;  %s271_s3 = inlined_call_operand.vmem [shape: bf16[16,32], index: 3, kind: input, shape index: {}]   ;;  %s272_s2 = inlined_call_operand.vmem [shape: f32[1,32], index: 2, kind: input, shape index: {}]   ;;  %s273_s4 = inlined_call_operand.vmem [shape: f32[1,32], index: 4, kind: input, shape index: {}]   ;;  %s274_s5 = inlined_call_operand.vmem [shape: f32[1,32], index: 5, kind: input, shape index: {}]   ;;  %s275_s6 = inlined_call_operand.vmem [shape: bf16[16,32], index: 6, kind: output, shape index: {}]  }
   0x1   :  { %183 = vmatprep.subr.bf16.mxu0 %v200_v0  ;;  %v193_v1 = vld [vmem:[%s269_s1 + $0x8] sm:$0xff]   ;;  %187 = vmatprep.mubr.msk.bf16.mxu0 %vm201_vm0, %v200_v0  ;;  %v194_v2 = vld [vmem:[%s269_s1] sm:$0xff]  }
   0x2   :  { %184 = vmatpush3.bf16.msra.mxu0 %v193_v1  ;;  %v195_v3 = vld [vmem:[%s270_s0] sm:$0xff]  }
   0x3   :  { %185 = vmatprep.subr.bf16.mxu0 %v200_v0  ;;  %v177_v4 = vld [vmem:[%s271_s3] sm:$0xff]  }
   0x4   :  { %v165_v5 = vld [vmem:[%s272_s2] ss:$0 sm:$0xff]  ;;  %v178_v6 = vunpack.c.l.bf16 %v177_v4  ;;  %v179_v11 = vunpack.c.h.bf16 %v177_v4 }
   0x5   :  { %v170_v35 = vld [vmem:[%s273_s4] ss:$0 sm:$0xff] }
   0x6   :  { %186 = vmatpush3.bf16.msra.mxu0 %v194_v2  ;;  %v171_v37 = vld [vmem:[%s274_s5] ss:$0 sm:$0xff] }
   0x9   :  { %188 = vmatmul.mubr.msk.bf16.vlgmr.msra.gmra.mxu0 %vm54_vm1, %v195_v3 }
  0xc9   :  { %v92_v7 = vpop.f32.mrf.mxu0 }
  0xca   :  { %v93_v8 = vadd.f32 %v165_v5, %v92_v7 }
  0xcb   :  { %v189_v9 = vpop.f32.mrf.mxu0 }
  0xcc   :  { %v103_v10 = vadd.f32 %v178_v6, %v93_v8 }
  0xcd   :  { %v95_v12 = vpop.f32.mrf.mxu0 }
  0xce   :  { %v96_v13 = vadd.f32 %v165_v5, %v95_v12  ;;  %v105_v14 = vsel %vm54_vm1, %v103_v10, 0.0 }
  0xcf   :  { %106 = vadd.xlane.f32.xlu0 %v105_v14  ;;  %v190_v15 = vpop.f32.mrf.mxu0 }
  0xd0   :  { %v104_v16 = vadd.f32 %v179_v11, %v96_v13 }
  0xd2   :  { %v108_v17 = vsel %vm54_vm1, %v104_v16, 0.0 }
  0xd3   :  { %109 = vadd.xlane.f32.xlu0 %v108_v17 }
 0x158   :  { %v107_v18 = vpop.xlane.xlu0 %106 }
 0x159   :  { %v112_v19 = vmul.f32 0.03125, %v107_v18 }
 0x15b   :  { %v114_v20 = vsub.f32 %v103_v10, %v112_v19 }
 0x15c   :  { %v110_v21 = vpop.xlane.xlu0 %109 }
 0x15d   :  { %v113_v22 = vmul.f32 0.03125, %v110_v21  ;;  %v116_v23 = vmul.f32 %v114_v20, %v114_v20 }
 0x15f   :  { %v115_v24 = vsub.f32 %v104_v16, %v113_v22  ;;  %v118_v25 = vsel %vm54_vm1, %v116_v23, 0.0 }
 0x160   :  { %119 = vadd.xlane.f32.xlu1 %v118_v25 }
 0x161   :  { %v117_v26 = vmul.f32 %v115_v24, %v115_v24 }
 0x163   :  { %v121_v27 = vsel %vm54_vm1, %v117_v26, 0.0 }
 0x164   :  { %122 = vadd.xlane.f32.xlu1 %v121_v27 }
 0x1e9   :  { %v120_v28 = vpop.xlane.xlu1 %119 }
 0x1ea   :  { %v124_v29 = vmul.f32 0.03125, %v120_v28 }
 0x1ec   :  { %v126_v30 = vadd.f32 1e-05, %v124_v29 }
 0x1ed   :  { %v123_v31 = vpop.xlane.xlu1 %122 }
 0x1ee   :  { %196 = vrsqrt.f32 %v126_v30  ;;  %v125_v32 = vmul.f32 0.03125, %v123_v31 }
 0x1f0   :  { %v127_v33 = vadd.f32 1e-05, %v125_v32 }
 0x1f2   :  { %198 = vrsqrt.f32 %v127_v33 }
 0x1fb   :  { %v197_v34 = vpop.eup %196 }
 0x1fc   :  { %v130_v36 = vmul.f32 %v197_v34, %v114_v20 }
 0x1fe   :  { %v139_v38 = vmul.f32 %v170_v35, %v130_v36 }
 0x1ff   :  { %v199_v39 = vpop.eup %198 }
 0x200   :  { %v148_v40 = vadd.f32 %v171_v37, %v139_v38  ;;  %v131_v41 = vmul.f32 %v199_v39, %v115_v24 }
 0x202   :  { %v174_v42 = vpack.c.bf16 %v148_v40, %v148_v40  ;;  %v140_v43 = vmul.f32 %v170_v35, %v131_v41 }
 0x204   :  { %159 = vst.msk [vmem:[%s275_s6] sm:$0xf] %vm158_vm2, %v174_v42  ;;  %v149_v44 = vadd.f32 %v171_v37, %v140_v43 }
 0x206   :  { %v175_v45 = vpack.c.bf16 %v149_v44, %v149_v44 }
 0x208   :  { %160 = vst.msk [vmem:[%s275_s6 + $0x4] sm:$0xf] %vm158_vm2, %v175_v45 }

// kernel: transformer_forward.16
= control target key start
LH: loop header
LB: loop body
LE: loop exit
PB: predicated region body
PF: predicated region fallthrough
CT: control target
= control target key end

     0   :  { %v132_v0 = vmov 0.0   ;;  %vm133_vm0 = vmmov 0   ;;  %vm45_vm1 = vcmask 261120   ;;  %vm100_vm2 = vcmask 257024   ;;  %s172_s1 = inlined_call_operand.vmem [shape: bf16[32,32], index: 1, kind: input, shape index: {}]   ;;  %s173_s0 = inlined_call_operand.vmem [shape: bf16[16,32], index: 0, kind: input, shape index: {}]   ;;  %s174_s2 = inlined_call_operand.vmem [shape: f32[1,32], index: 2, kind: input, shape index: {}]   ;;  %s175_s3 = inlined_call_operand.vmem [shape: bf16[16,32], index: 3, kind: output, shape index: {}]  }
   0x1   :  { %119 = vmatprep.subr.bf16.mxu0 %v132_v0  ;;  %v129_v1 = vld [vmem:[%s172_s1 + $0x8] sm:$0xff]   ;;  %123 = vmatprep.mubr.msk.bf16.mxu0 %vm133_vm0, %v132_v0  ;;  %v130_v2 = vld [vmem:[%s172_s1] sm:$0xff]  }
   0x2   :  { %120 = vmatpush3.bf16.msra.mxu0 %v129_v1  ;;  %v131_v3 = vld [vmem:[%s173_s0] sm:$0xff]  }
   0x3   :  { %121 = vmatprep.subr.bf16.mxu0 %v132_v0  ;;  %v107_v4 = vld [vmem:[%s174_s2] ss:$0 sm:$0xff] }
   0x6   :  { %122 = vmatpush3.bf16.msra.mxu0 %v130_v2 }
   0x9   :  { %124 = vmatmul.mubr.msk.bf16.vlgmr.msra.gmra.mxu0 %vm45_vm1, %v131_v3 }
  0xc9   :  { %v83_v5 = vpop.f32.mrf.mxu0 }
  0xca   :  { %v84_v6 = vadd.f32 %v107_v4, %v83_v5 }
  0xcb   :  { %v125_v7 = vpop.f32.mrf.mxu0 }
  0xcc   :  { %v90_v8 = vmax.f32 %v84_v6, 0.0 }
  0xcd   :  { %v86_v9 = vpop.f32.mrf.mxu0 }
  0xce   :  { %v114_v10 = vpack.c.bf16 %v90_v8, %v90_v8  ;;  %v87_v11 = vadd.f32 %v107_v4, %v86_v9 }
  0xcf   :  { %v126_v12 = vpop.f32.mrf.mxu0 }
  0xd0   :  { %101 = vst.msk [vmem:[%s175_s3] sm:$0xf] %vm100_vm2, %v114_v10  ;;  %v91_v13 = vmax.f32 %v87_v11, 0.0 }
  0xd2   :  { %v115_v14 = vpack.c.bf16 %v91_v13, %v91_v13 }
  0xd4   :  { %102 = vst.msk [vmem:[%s175_s3 + $0x4] sm:$0xf] %vm100_vm2, %v115_v14 }

// kernel: transformer_forward.23
= control target key start
LH: loop header
LB: loop body
LE: loop exit
PB: predicated region body
PF: predicated region fallthrough
CT: control target
= control target key end

     0   :  { %v117_v0 = vmov 0.0   ;;  %vm118_vm0 = vmmov 0   ;;  %vm45_vm1 = vcmask 261120   ;;  %s157_s1 = inlined_call_operand.vmem [shape: bf16[32,128], index: 1, kind: input, shape index: {}]   ;;  %s158_s0 = inlined_call_operand.vmem [shape: bf16[16,32], index: 0, kind: input, shape index: {}]   ;;  %s159_s2 = inlined_call_operand.vmem [shape: f32[1,128], index: 2, kind: input, shape index: {}]   ;;  %s160_s3 = inlined_call_operand.vmem [shape: f32[16,128], index: 3, kind: output, shape index: {}]  }
   0x1   :  { %104 = vmatprep.subr.bf16.mxu0 %v117_v0  ;;  %v114_v1 = vld [vmem:[%s157_s1 + $0x8] sm:$0xff]   ;;  %108 = vmatprep.mubr.msk.bf16.mxu0 %vm118_vm0, %v117_v0  ;;  %v115_v2 = vld [vmem:[%s157_s1] sm:$0xff]  }
   0x2   :  { %105 = vmatpush3.bf16.msra.mxu0 %v114_v1  ;;  %v116_v3 = vld [vmem:[%s158_s0] sm:$0xff]  }
   0x3   :  { %106 = vmatprep.subr.bf16.mxu0 %v117_v0  ;;  %v96_v4 = vld [vmem:[%s159_s2] ss:$0 sm:$0xff] }
   0x6   :  { %107 = vmatpush3.bf16.msra.mxu0 %v115_v2 }
   0x9   :  { %109 = vmatmul.mubr.msk.bf16.vlgmr.msra.gmra.mxu0 %vm45_vm1, %v116_v3 }
  0xc9   :  { %v83_v5 = vpop.f32.mrf.mxu0 }
  0xca   :  { %v84_v6 = vadd.f32 %v96_v4, %v83_v5 }
  0xcb   :  { %v110_v7 = vpop.f32.mrf.mxu0 }
  0xcc   :  { %90 = vst [vmem:[%s160_s3] sm:$0xff] %v84_v6 }
  0xcd   :  { %v86_v8 = vpop.f32.mrf.mxu0 }
  0xce   :  { %v87_v9 = vadd.f32 %v96_v4, %v86_v8 }
  0xcf   :  { %v111_v10 = vpop.f32.mrf.mxu0 }
  0xd0   :  { %91 = vst [vmem:[%s160_s3 + $0x8] sm:$0xff] %v87_v9 }

</bundles_post_ra>
